<compile_context>
chip_gen: v6e
topology: v6e:2x2x1
jax: 0.10.0
libtpu: 0.0.40
codegen_flags: <defaults>
</compile_context>

<pallas_src>
import jax
import jax.numpy as jnp
from jax.experimental import pallas as pl
from jax.experimental.pallas import tpu as pltpu


# ---------------------------------------------------------------------------
# Kernel
# ---------------------------------------------------------------------------
def _make_ensemble_kernel(n_total, nb, d_out_pad):
    """Grid: (batch_tile, member_block); axis 1 is the reduction over members.

      x_ref:    (tb, D_in+1)            bf16 (ones-column folds the bias in)
      w_ref:    (1, D_in+1, nb*D_out)   bf16, nb members concatenated on D_out
      mean_ref: (tb, D_out)             f32 output; holds sum(d) while looping
      var_ref:  (tb, D_out)             f32 output; holds sum(d^2) while looping
      shift_ref:(tb, D_out)             f32 scratch; member 0's prediction
    """
    inv_n = 1.0 / float(n_total)
    # torch.var(dim=0) is unbiased (ddof=1); N == 1 would give NaN in torch,
    # here we guard the denominator and return 0 variance instead.
    inv_nm1 = 1.0 / float(max(n_total - 1, 1))

    def kernel(x_ref, w_ref, mean_ref, var_ref, shift_ref):
        j = pl.program_id(1)
        last = pl.num_programs(1) - 1

        # One wide MXU matmul per step: bf16 x bf16 -> f32 accumulate.
        # Bias is row D_in of the weight (x's last column is ones).
        y = jnp.dot(x_ref[...], w_ref[0], preferred_element_type=jnp.float32)

        @pl.when(j == 0)
        def _():
            # First member's prediction is the shift for numerically stable
            # (shifted) mean/variance accumulation.
            shift_ref[...] = y[:, :d_out_pad]
            mean_ref[...] = jnp.zeros_like(mean_ref)   # running sum(d)
            var_ref[...] = jnp.zeros_like(var_ref)     # running sum(d^2)

        shift = shift_ref[...]
        sd = mean_ref[...]
        sd2 = var_ref[...]
        # Static, 128-lane-aligned slices over the nb members of this block:
        # pure lane selects, VPU work hides under the MXU.
        for k in range(nb):
            d = y[:, k * d_out_pad:(k + 1) * d_out_pad] - shift
            sd = sd + d
            sd2 = sd2 + d * d
        mean_ref[...] = sd
        var_ref[...] = sd2

        @pl.when(j == last)
        def _():
            s = mean_ref[...]
            mean_ref[...] = shift_ref[...] + s * inv_n
            var = (var_ref[...] - (s * s) * inv_n) * inv_nm1
            # Clamp tiny negative values from floating-point cancellation.
            var_ref[...] = jnp.maximum(var, 0.0)

    return kernel


# ---------------------------------------------------------------------------
# Tiling heuristics (generation / VMEM aware)
# ---------------------------------------------------------------------------
def _vmem_caps():
    """Returns (vmem_limit_cap, small_vmem) for the current TPU generation."""
    try:
        cap = int(pltpu.get_tpu_info().vmem_capacity_bytes)
    except Exception:  # non-TPU / query unavailable: assume 128 MiB parts
        cap = 128 << 20
    if cap <= (64 << 20):          # v7x-class: 64 MiB per TensorCore
        return 48 << 20, True
    return 100 << 20, False        # v5e / v6e: 128 MiB physical


def _pick_members_per_block(n, d_in_aug, d_out_pad, itemsize, vmem_limit,
                            small_vmem):
    """Members concatenated per grid step.  Prefer all N resident at once."""
    full_2buf = 2 * n * d_in_aug * d_out_pad * itemsize   # double-buffered
    if full_2buf <= vmem_limit // 4:
        return n                                          # weights fetched once
    per_block_budget = (8 << 20) if small_vmem else (32 << 20)
    best = 1
    for nb in range(1, n + 1):
        if n % nb == 0 and 2 * nb * d_in_aug * d_out_pad * itemsize <= per_block_budget:
            best = nb
    return best


def _vmem_estimate(tb, d_in_aug, nb, d_out_pad, itemsize):
    """Conservative VMEM usage for one grid step (incl. f32 matmul temp)."""
    w_bytes = 2 * nb * d_in_aug * d_out_pad * itemsize     # weights, 2 buffers
    x_bytes = 2 * tb * d_in_aug * itemsize                 # x tile, 2 buffers
    y_bytes = tb * nb * d_out_pad * 4                      # f32 wide-matmul temp
    out_bytes = 2 * 2 * tb * d_out_pad * 4                 # mean+var, 2 buffers
    scratch = tb * d_out_pad * 4                           # shift scratch
    headroom = 2 << 20                                     # compiler internals
    return w_bytes + x_bytes + y_bytes + out_bytes + scratch + headroom


def _pick_batch_tile(b_rows, d_in_aug, nb, d_out_pad, itemsize, vmem_limit):
    """Largest batch tile (multiple of 8) whose full footprint fits VMEM."""
    tb_cap = 8
    for tb in (2048, 1024, 512, 256, 128, 64, 32, 16, 8):
        if _vmem_estimate(tb, d_in_aug, nb, d_out_pad, itemsize) <= vmem_limit:
            tb_cap = tb
            break
    return min(tb_cap, b_rows)


# ---------------------------------------------------------------------------
# Wrapper
# ---------------------------------------------------------------------------
def ensemble_forward(x, W, b, *, compute_dtype=jnp.bfloat16):
    """x: (B, D_in), W: (N, D_in, D_out), b: (N, D_out) -> dict(mean, variance).

    Note: inputs stream in `compute_dtype` (bf16 by default) with f32 MXU
    accumulation; pass compute_dtype=jnp.float32 for exact-f32 numerics.
    """
    N, D_in, D_out = W.shape
    B = x.shape[0]
    itemsize = jnp.dtype(compute_dtype).itemsize

    # ---- fold bias into the matmul via an appended ones-column on x --------
    d_in_aug = D_in + 1
    x_aug = jnp.concatenate([x, jnp.ones((B, 1), x.dtype)], axis=1)
    W_aug = jnp.concatenate([W, b[:, None, :]], axis=1)      # (N, D_in+1, D_out)

    # ---- pad D_out to a multiple of 128 (lane-aligned slices & dense stores)
    d_out_pad = max(128, -(-D_out // 128) * 128)
    if d_out_pad != D_out:
        W_aug = jnp.pad(W_aug, ((0, 0), (0, 0), (0, d_out_pad - D_out)))

    # ---- generation-aware VMEM budget & tiling ------------------------------
    vmem_cap, small_vmem = _vmem_caps()
    nb = _pick_members_per_block(N, d_in_aug, d_out_pad, itemsize, vmem_cap,
                                 small_vmem)
    n_blocks = N // nb

    b_rows = -(-B // 8) * 8                              # batch rounded to 8
    tb = _pick_batch_tile(b_rows, d_in_aug, nb, d_out_pad, itemsize, vmem_cap)
    n_btiles = -(-b_rows // tb)
    B_pad = n_btiles * tb

    x_c = x_aug.astype(compute_dtype)
    if B_pad != B:
        x_c = jnp.pad(x_c, ((0, B_pad - B), (0, 0)))

    # Concatenate nb members' (augmented) weights along the output dim:
    # (n_blocks, D_in+1, nb*D_out_pad).
    W_cat = W_aug.astype(compute_dtype).reshape(n_blocks, nb, d_in_aug, d_out_pad)
    W_cat = W_cat.transpose(0, 2, 1, 3).reshape(n_blocks, d_in_aug, nb * d_out_pad)

    # Explicit VMEM limit from the actual footprint (f32 temp included).
    est = _vmem_estimate(tb, d_in_aug, nb, d_out_pad, itemsize)
    vmem_limit = int(min(vmem_cap, max(32 << 20, int(1.25 * est))))

    kernel = _make_ensemble_kernel(N, nb, d_out_pad)

    mean, var = pl.pallas_call(
        kernel,
        out_shape=(
            jax.ShapeDtypeStruct((B_pad, d_out_pad), jnp.float32),
            jax.ShapeDtypeStruct((B_pad, d_out_pad), jnp.float32),
        ),
        grid_spec=pltpu.PrefetchScalarGridSpec(
            num_scalar_prefetch=0,
            grid=(n_btiles, n_blocks),
            in_specs=[
                pl.BlockSpec((tb, d_in_aug), lambda bi, j: (bi, 0)),
                # When n_blocks == 1 this index is constant over the whole
                # grid -> weights are fetched from HBM exactly once.
                pl.BlockSpec((1, d_in_aug, nb * d_out_pad),
                             lambda bi, j: (j, 0, 0)),
            ],
            out_specs=[
                pl.BlockSpec((tb, d_out_pad), lambda bi, j: (bi, 0)),
                pl.BlockSpec((tb, d_out_pad), lambda bi, j: (bi, 0)),
            ],
            scratch_shapes=[
                pltpu.VMEM((tb, d_out_pad), jnp.float32),   # shift (member 0)
            ],
        ),
        compiler_params=pltpu.CompilerParams(
            dimension_semantics=("parallel", "arbitrary"),
            vmem_limit_bytes=vmem_limit,
        ),
    )(x_c, W_cat)

    return {"mean": mean[:B, :D_out], "variance": var[:B, :D_out]}


# ---------------------------------------------------------------------------
# Self-test
# ---------------------------------------------------------------------------
if __name__ == "__main__":
    # Deterministic small setup: N=4 linear models, batch=8, 32 -> 128.
    key = jax.random.PRNGKey(0)
    k_x, k_w, k_b = jax.random.split(key, 3)

    N, B, D_in, D_out = 4, 8, 32, 128
    x = jax.random.normal(k_x, (B, D_in), dtype=jnp.float32)
    W = jax.random.normal(k_w, (N, D_in, D_out), dtype=jnp.float32) * 0.1
    b = jax.random.normal(k_b, (N, D_out), dtype=jnp.float32) * 0.1

    out = ensemble_forward(x, W, b)
    jax.block_until_ready(out)

    # Pure-JAX reference against the same bf16-quantized operands
    # (kernel streams x/W/b in bf16 with f32 MXU accumulation).
    xq = x.astype(jnp.bfloat16).astype(jnp.float32)
    Wq = W.astype(jnp.bfloat16).astype(jnp.float32)
    bq = b.astype(jnp.bfloat16).astype(jnp.float32)
    stacked_ref = jnp.einsum("bi,nio->nbo", xq, Wq) + bq[:, None, :]
    mean_ref = stacked_ref.mean(axis=0)
    var_ref = stacked_ref.var(axis=0, ddof=1)   # torch.var default: unbiased

    assert jnp.allclose(out["mean"], mean_ref, atol=2e-3, rtol=2e-3), (
        float(jnp.max(jnp.abs(out["mean"] - mean_ref))))
    assert jnp.allclose(out["variance"], var_ref, atol=2e-3, rtol=2e-3), (
        float(jnp.max(jnp.abs(out["variance"] - var_ref))))

    print("KERNEL_OK")
</pallas_src>

<mosaic_0001>
module attributes {stable_mosaic.version = 11 : i64} {
  func.func @kernel(%arg0: i32, %arg1: i32, %arg2: memref<8x33xbf16, #tpu.memory_space<vmem>>, %arg3: memref<1x33x512xbf16, #tpu.memory_space<vmem>>, %arg4: memref<8x128xf32, #tpu.memory_space<vmem>>, %arg5: memref<8x128xf32, #tpu.memory_space<vmem>>, %arg6: memref<8x128xf32, #tpu.memory_space<vmem>>) attributes {dimension_semantics = [#tpu.dimension_semantics<parallel>, #tpu.dimension_semantics<arbitrary>], iteration_bounds = array<i64: 1, 1>, scalar_prefetch = 0 : i64, scratch_operands = 1 : i64, tpu.core_type = #tpu.core_type<tc>, window_params = [{transform_indices = @transform_0, window_bounds = array<i64: 8, 33>}, {transform_indices = @transform_1, window_bounds = array<i64: 1, 33, 512>}, {transform_indices = @transform_2, window_bounds = array<i64: 8, 128>}, {transform_indices = @transform_3, window_bounds = array<i64: 8, 128>}]} {
    %c0 = arith.constant 0 : index
    %c0_0 = arith.constant 0 : index
    %0 = vector.load %arg2[%c0, %c0_0] : memref<8x33xbf16, #tpu.memory_space<vmem>>, vector<8x33xbf16>
    %c0_1 = arith.constant 0 : index
    %c0_2 = arith.constant 0 : index
    %c0_3 = arith.constant 0 : index
    %1 = vector.load %arg3[%c0_1, %c0_2, %c0_3] : memref<1x33x512xbf16, #tpu.memory_space<vmem>>, vector<1x33x512xbf16>
    %2 = vector.shape_cast %1 : vector<1x33x512xbf16> to vector<33x512xbf16>
    %cst = arith.constant dense<0.000000e+00> : vector<8x512xf32>
    %3 = tpu.matmul %0, %2, %cst {dimension_numbers = #tpu.dot_dimension_numbers<[1], [0], [0], [1], [0, 0, 1, 1], [], []>} : vector<8x33xbf16>, vector<33x512xbf16>, vector<8x512xf32> -> vector<8x512xf32>
    %c0_i32 = arith.constant 0 : i32
    %4 = arith.cmpi eq, %arg1, %c0_i32 : i32
    %5 = arith.extui %4 : i1 to i32
    %c0_i32_4 = arith.constant 0 : i32
    %6 = arith.cmpi ne, %5, %c0_i32_4 : i32
    scf.if %6 {
      %35 = vector.extract_strided_slice %3 {offsets = [0, 0], sizes = [8, 128], strides = [1, 1]} : vector<8x512xf32> to vector<8x128xf32>
      %c0_17 = arith.constant 0 : index
      %c0_18 = arith.constant 0 : index
      %36 = vector.load %arg6[%c0_17, %c0_18] : memref<8x128xf32, #tpu.memory_space<vmem>>, vector<8x128xf32>
      tpu.vector_store %arg6[%c0_17, %c0_18], %35 {strides = array<i32>} : memref<8x128xf32, #tpu.memory_space<vmem>>, vector<8x128xf32>,
      %cst_19 = arith.constant 0.000000e+00 : f32
      %37 = vector.broadcast %cst_19 : f32 to vector<8x128xf32>
      %c0_20 = arith.constant 0 : index
      %c0_21 = arith.constant 0 : index
      %38 = vector.load %arg4[%c0_20, %c0_21] : memref<8x128xf32, #tpu.memory_space<vmem>>, vector<8x128xf32>
      tpu.vector_store %arg4[%c0_20, %c0_21], %37 {strides = array<i32>} : memref<8x128xf32, #tpu.memory_space<vmem>>, vector<8x128xf32>,
      %cst_22 = arith.constant 0.000000e+00 : f32
      %39 = vector.broadcast %cst_22 : f32 to vector<8x128xf32>
      %c0_23 = arith.constant 0 : index
      %c0_24 = arith.constant 0 : index
      %40 = vector.load %arg5[%c0_23, %c0_24] : memref<8x128xf32, #tpu.memory_space<vmem>>, vector<8x128xf32>
      tpu.vector_store %arg5[%c0_23, %c0_24], %39 {strides = array<i32>} : memref<8x128xf32, #tpu.memory_space<vmem>>, vector<8x128xf32>,
    } else {
    }
    %c0_5 = arith.constant 0 : index
    %c0_6 = arith.constant 0 : index
    %7 = vector.load %arg6[%c0_5, %c0_6] : memref<8x128xf32, #tpu.memory_space<vmem>>, vector<8x128xf32>
    %c0_7 = arith.constant 0 : index
    %c0_8 = arith.constant 0 : index
    %8 = vector.load %arg4[%c0_7, %c0_8] : memref<8x128xf32, #tpu.memory_space<vmem>>, vector<8x128xf32>
    %c0_9 = arith.constant 0 : index
    %c0_10 = arith.constant 0 : index
    %9 = vector.load %arg5[%c0_9, %c0_10] : memref<8x128xf32, #tpu.memory_space<vmem>>, vector<8x128xf32>
    %10 = vector.extract_strided_slice %3 {offsets = [0, 0], sizes = [8, 128], strides = [1, 1]} : vector<8x512xf32> to vector<8x128xf32>
    %11 = arith.subf %10, %7 : vector<8x128xf32>
    %12 = arith.addf %8, %11 : vector<8x128xf32>
    %13 = arith.mulf %11, %11 : vector<8x128xf32>
    %14 = arith.addf %9, %13 : vector<8x128xf32>
    %15 = vector.extract_strided_slice %3 {offsets = [0, 128], sizes = [8, 128], strides = [1, 1]} : vector<8x512xf32> to vector<8x128xf32>
    %16 = arith.subf %15, %7 : vector<8x128xf32>
    %17 = arith.addf %12, %16 : vector<8x128xf32>
    %18 = arith.mulf %16, %16 : vector<8x128xf32>
    %19 = arith.addf %14, %18 : vector<8x128xf32>
    %20 = vector.extract_strided_slice %3 {offsets = [0, 256], sizes = [8, 128], strides = [1, 1]} : vector<8x512xf32> to vector<8x128xf32>
    %21 = arith.subf %20, %7 : vector<8x128xf32>
    %22 = arith.addf %17, %21 : vector<8x128xf32>
    %23 = arith.mulf %21, %21 : vector<8x128xf32>
    %24 = arith.addf %19, %23 : vector<8x128xf32>
    %25 = vector.extract_strided_slice %3 {offsets = [0, 384], sizes = [8, 128], strides = [1, 1]} : vector<8x512xf32> to vector<8x128xf32>
    %26 = arith.subf %25, %7 : vector<8x128xf32>
    %27 = arith.addf %22, %26 : vector<8x128xf32>
    %28 = arith.mulf %26, %26 : vector<8x128xf32>
    %29 = arith.addf %24, %28 : vector<8x128xf32>
    %c0_11 = arith.constant 0 : index
    %c0_12 = arith.constant 0 : index
    %30 = vector.load %arg4[%c0_11, %c0_12] : memref<8x128xf32, #tpu.memory_space<vmem>>, vector<8x128xf32>
    tpu.vector_store %arg4[%c0_11, %c0_12], %27 {strides = array<i32>} : memref<8x128xf32, #tpu.memory_space<vmem>>, vector<8x128xf32>,
    %c0_13 = arith.constant 0 : index
    %c0_14 = arith.constant 0 : index
    %31 = vector.load %arg5[%c0_13, %c0_14] : memref<8x128xf32, #tpu.memory_space<vmem>>, vector<8x128xf32>
    tpu.vector_store %arg5[%c0_13, %c0_14], %29 {strides = array<i32>} : memref<8x128xf32, #tpu.memory_space<vmem>>, vector<8x128xf32>,
    %c0_i32_15 = arith.constant 0 : i32
    %32 = arith.cmpi eq, %arg1, %c0_i32_15 : i32
    %33 = arith.extui %32 : i1 to i32
    %c0_i32_16 = arith.constant 0 : i32
    %34 = arith.cmpi ne, %33, %c0_i32_16 : i32
    scf.if %34 {
      %c0_17 = arith.constant 0 : index
      %c0_18 = arith.constant 0 : index
      %35 = vector.load %arg4[%c0_17, %c0_18] : memref<8x128xf32, #tpu.memory_space<vmem>>, vector<8x128xf32>
      %c0_19 = arith.constant 0 : index
      %c0_20 = arith.constant 0 : index
      %36 = vector.load %arg6[%c0_19, %c0_20] : memref<8x128xf32, #tpu.memory_space<vmem>>, vector<8x128xf32>
      %cst_21 = arith.constant 2.500000e-01 : f32
      %37 = vector.broadcast %cst_21 : f32 to vector<8x128xf32>
      %38 = arith.mulf %35, %37 : vector<8x128xf32>
      %39 = arith.addf %36, %38 : vector<8x128xf32>
      %c0_22 = arith.constant 0 : index
      %c0_23 = arith.constant 0 : index
      %40 = vector.load %arg4[%c0_22, %c0_23] : memref<8x128xf32, #tpu.memory_space<vmem>>, vector<8x128xf32>
      tpu.vector_store %arg4[%c0_22, %c0_23], %39 {strides = array<i32>} : memref<8x128xf32, #tpu.memory_space<vmem>>, vector<8x128xf32>,
      %c0_24 = arith.constant 0 : index
      %c0_25 = arith.constant 0 : index
      %41 = vector.load %arg5[%c0_24, %c0_25] : memref<8x128xf32, #tpu.memory_space<vmem>>, vector<8x128xf32>
      %42 = arith.mulf %35, %35 : vector<8x128xf32>
      %cst_26 = arith.constant 2.500000e-01 : f32
      %43 = vector.broadcast %cst_26 : f32 to vector<8x128xf32>
      %44 = arith.mulf %42, %43 : vector<8x128xf32>
      %45 = arith.subf %41, %44 : vector<8x128xf32>
      %cst_27 = arith.constant 0.333333343 : f32
      %46 = vector.broadcast %cst_27 : f32 to vector<8x128xf32>
      %47 = arith.mulf %45, %46 : vector<8x128xf32>
      %cst_28 = arith.constant 0.000000e+00 : f32
      %48 = vector.broadcast %cst_28 : f32 to vector<8x128xf32>
      %49 = arith.maximumf %47, %48 : vector<8x128xf32>
      %c0_29 = arith.constant 0 : index
      %c0_30 = arith.constant 0 : index
      %50 = vector.load %arg5[%c0_29, %c0_30] : memref<8x128xf32, #tpu.memory_space<vmem>>, vector<8x128xf32>
      tpu.vector_store %arg5[%c0_29, %c0_30], %49 {strides = array<i32>} : memref<8x128xf32, #tpu.memory_space<vmem>>, vector<8x128xf32>,
    } else {
    }
    return
  }
  func.func @transform_0(%arg0: i32, %arg1: i32) -> (i32, i32) {
    %c0_i32 = arith.constant 0 : i32
    %c0_i32_0 = arith.constant 0 : i32
    return %arg0, %c0_i32 : i32, i32
  }
  func.func @transform_1(%arg0: i32, %arg1: i32) -> (i32, i32, i32) {
    %c0_i32 = arith.constant 0 : i32
    %c0_i32_0 = arith.constant 0 : i32
    %c0_i32_1 = arith.constant 0 : i32
    return %arg1, %c0_i32, %c0_i32_0 : i32, i32, i32
  }
  func.func @transform_2(%arg0: i32, %arg1: i32) -> (i32, i32) {
    %c0_i32 = arith.constant 0 : i32
    %c0_i32_0 = arith.constant 0 : i32
    return %arg0, %c0_i32 : i32, i32
  }
  func.func @transform_3(%arg0: i32, %arg1: i32) -> (i32, i32) {
    %c0_i32 = arith.constant 0 : i32
    %c0_i32_0 = arith.constant 0 : i32
    return %arg0, %c0_i32 : i32, i32
  }
}

</mosaic_0001>

<bundles_post_ra>
// kernel: tpu_custom_call.1
= control target key start
LH: loop header
LB: loop body
LE: loop exit
PB: predicated region body
PF: predicated region fallthrough
CT: control target
= control target key end

     0   :  { %9 = vsyncpa [#allocation4], 0  ;;  %s442_s0 = inlined_call_operand.hbm [shape: bf16[8,33], index: 0, kind: input, shape index: {}]   ;;  %s443_s1 = inlined_call_operand.hbm [shape: bf16[1,33,512], index: 1, kind: input, shape index: {}]   ;;  %s444_s2 = inlined_call_operand.hbm [shape: f32[8,128], index: 2, kind: output, shape index: {0}]   ;;  %s445_s3 = inlined_call_operand.hbm [shape: f32[8,128], index: 3, kind: output, shape index: {1}]  }
   0x1   :  { %10 = vsyncpa [#allocation7], 0 }
   0x2   :  { %11 = vsyncpa [#allocation5], 0 }
   0x3   :  { %12 = vsyncpa [#allocation10], 0  ;;  %s403_s12 = smov [#allocation3]   ;;  %s404_s14 = smov [#allocation6]  }
   0x4   :  { %s19_s13 = sshll.u32 %s403_s12, 4  ;;  %s28_s15 = sshll.u32 %s404_s14, 4  ;;  %s20_s13 = int_to_ptr.vmem [resolvable:$true] %s19_s13  ;;  %s29_s15 = int_to_ptr.vmem [resolvable:$true] %s28_s15 }
   0x5   :  { %s323_s16 = scalar_lea.vmem %s20_s13, 64  ;;  %p328_p1 = scmp.lt.s32.totalorder %s20_s13, %s20_s13 }
   0x6   :  { %p324_p0 = scmp.ne.s32.totalorder %s20_s13, %s323_s16  ;;  %p329_p2 = scmp.lt.s32.totalorder %s323_s16, %s323_s16 }
   0x8   :  { %p330_p3 = por %p329_p2, %p328_p1 }
   0xa   :  { %p331_p4 = pnand %p330_p3, %p324_p0 }
   0xc   :  { %334 = shalt.err (!%p331_p4)
}
   0xd   :  { %22 = dma.hbm_to_vmem [thread:$0]  %s442_s0, 64, %s20_s13, [#allocation4]  }
   0xe   :  { %s343_s19 = scalar_lea.vmem %s29_s15, 1280  ;;  %p348_p6 = scmp.lt.s32.totalorder %s29_s15, %s29_s15 }
   0xf   :  { %p344_p5 = scmp.ne.s32.totalorder %s29_s15, %s343_s19  ;;  %p349_p7 = scmp.lt.s32.totalorder %s343_s19, %s343_s19 }
  0x11   :  { %p350_p8 = por %p349_p7, %p348_p6 }
  0x13   :  { %p351_p9 = pnand %p350_p8, %p344_p5 }
  0x15   :  { %354 = shalt.err (!%p351_p9)
}
  0x16   :  { %s405_s20 = smov 256   ;;  %s406_s21 = smov 16  }
  0x17   :  { %34 = dma.hbm_to_vmem [thread:$0]  %s443_s1, 1280, %s29_s15, [#allocation7], %s405_s20, %s405_s20, %s406_s21  }
  0x18   :  { %395 = dma.done.wait [#allocation4], 64  }
  0x19   :  { %396 = vsyncadd [#allocation4], 4294967232 }
  0x1a   :  { %397 = dma.done.wait [#allocation7], 1280  }
  0x1b   :  { %398 = vsyncadd [#allocation7], 4294966016  ;;  %v407_v0 = vmov 0   ;;  %vm107_vm0 = vcmask 1040384   ;;  %v51_v1 = vld [vmem:[#allocation6 + $0x40] sm:$0x11] }
  0x1c   :  { %154 = vmatprep.mubr.bf16.mxu0 %v407_v0  ;;  %195 = vmatprep.mubr.bf16.mxu1 %v407_v0  ;;  %v109_v2 = vsel %vm107_vm0, 65535, %v407_v0  ;;  %v52_v3 = vld [vmem:[#allocation6 + $0x48] sm:$0x11]  ;;  %v286_v4 = vcombine.high %v51_v1, %v51_v1  ;;  %v285_v6 = vcombine.low %v51_v1, %v51_v1  ;;  %v303_v8 = vld [vmem:[#allocation6 + $0x24] ss:$16 sps:$4 sm:$0xff]   ;;  %vm103_vm1 = vcmask 269312  }
  0x1d   :  { %v288_v5 = vcombine.high %v52_v3, %v52_v3  ;;  %v287_v7 = vcombine.low %v52_v3, %v52_v3  ;;  %v305_v13 = vld [vmem:[#allocation6 + $0x2c] ss:$16 sps:$4 sm:$0xff]   ;;  %v307_v14 = vld [vmem:[#allocation6 + $0x20] ss:$16 sps:$4 sm:$0xff]   ;;  %v308_v15 = vld [vmem:[#allocation6 + $0x28] ss:$16 sps:$4 sm:$0xff]  }
  0x1e   :  { %v114_v9 = vand.u32 %v286_v4, %v109_v2  ;;  %v111_v11 = vand.u32 %v285_v6, %v109_v2  ;;  %v309_v16 = vld [vmem:[#allocation6 + $0x4] ss:$16 sps:$4 sm:$0xff]   ;;  %v311_v17 = vld [vmem:[#allocation6 + $0xc] ss:$16 sps:$4 sm:$0xff]   ;;  %v313_v18 = vld [vmem:[#allocation6] ss:$16 sps:$4 sm:$0xff]  }
  0x1f   :  { %v120_v10 = vand.u32 %v288_v5, %v109_v2  ;;  %v117_v12 = vand.u32 %v287_v7, %v109_v2  ;;  %v314_v19 = vld [vmem:[#allocation6 + $0x8] ss:$16 sps:$4 sm:$0xff]   ;;  %v42_v20 = vld [vmem:[#allocation3] sm:$0xf]  ;;  %s408_s0 = smov [#allocation8]   ;;  %s409_s24 = smov [#allocation9]  }
  0x20   :  { %132 = vmatprep.subr.bf16.mxu0 %v114_v9  ;;  %s253_s1 = sshll.u32 %s408_s0, 4  ;;  %s263_s25 = sshll.u32 %s409_s24, 4  ;;  %s254_s1 = int_to_ptr.vmem [resolvable:$true] %s253_s1  ;;  %s264_s25 = int_to_ptr.vmem [resolvable:$true] %s263_s25 }
  0x21   :  { %173 = vmatprep.subr.bf16.mxu1 %v120_v10  ;;  %133 = vmatpush1.bf16.msra.mxu0 %v111_v11  ;;  %s355_s26 = scalar_lea.vmem %s254_s1, 128  ;;  %p360_p11 = scmp.lt.s32.totalorder %s254_s1, %s254_s1 }
  0x22   :  { %174 = vmatpush1.bf16.msra.mxu1 %v117_v12  ;;  %134 = vmatprep.subr.bf16.mxu0 %v303_v8  ;;  %p356_p10 = scmp.ne.s32.totalorder %s254_s1, %s355_s26  ;;  %p361_p12 = scmp.lt.s32.totalorder %s355_s26, %s355_s26 }
  0x23   :  { %175 = vmatprep.subr.bf16.mxu1 %v305_v13 }
  0x24   :  { %p362_p13 = por %p361_p12, %p360_p11 }
  0x25   :  { %135 = vmatpush1.bf16.msra.mxu0 %v307_v14 }
  0x26   :  { %176 = vmatpush1.bf16.msra.mxu1 %v308_v15  ;;  %136 = vmatprep.subr.bf16.mxu0 %v309_v16  ;;  %p363_p0 = pnand %p362_p13, %p356_p10 }
  0x27   :  { %177 = vmatprep.subr.bf16.mxu1 %v311_v17 }
  0x29   :  { %137 = vmatpush1.bf16.msra.mxu0 %v313_v18 }
  0x2a   :  { %178 = vmatpush1.bf16.msra.mxu1 %v314_v19 }
  0x2c   :  { %289 = vmatmul.mubr.msk.bf16.vlgmr.msra.gmra.mxu0 %vm103_vm1, %v42_v20 }
  0x2d   :  { %290 = vmatmul.mubr.msk.bf16.vlgmr.msra.gmra.mxu1 %vm103_vm1, %v42_v20 }
  0xec   :  { %v156_v21 = vpop.f32.mrf.mxu0 }
  0xed   :  { %v197_v22 = vpop.f32.mrf.mxu1  ;;  %v214_v23 = vsub.f32 %v156_v21, %v156_v21 }
  0xee   :  { %v158_v24 = vpop.f32.mrf.mxu0  ;;  %v222_v26 = vsub.f32 %v197_v22, %v156_v21 }
  0xef   :  { %v199_v25 = vpop.f32.mrf.mxu1  ;;  %v216_v27 = vmul.f32 %v214_v23, %v214_v23  ;;  %v218_v28 = vsub.f32 %v158_v24, %v156_v21 }
  0xf0   :  { %v160_v29 = vpop.f32.mrf.mxu0  ;;  %v224_v35 = vmul.f32 %v222_v26, %v222_v26  ;;  %v226_v38 = vsub.f32 %v199_v25, %v156_v21 }
  0xf1   :  { %v201_v30 = vpop.f32.mrf.mxu1  ;;  %v219_v31 = vadd.f32 %v218_v28, %v214_v23  ;;  %v220_v32 = vmul.f32 %v218_v28, %v218_v28 }
  0xf2   :  { %v161_v33 = vpop.f32.mrf.mxu0  ;;  %v228_v41 = vmul.f32 %v226_v38, %v226_v38 }
  0xf3   :  { %v202_v34 = vpop.f32.mrf.mxu1  ;;  %v221_v36 = vadd.f32 %v220_v32, %v216_v27  ;;  %v223_v37 = vadd.f32 %v222_v26, %v219_v31 }
  0xf5   :  { %v225_v39 = vadd.f32 %v224_v35, %v221_v36  ;;  %v227_v40 = vadd.f32 %v226_v38, %v223_v37 }
  0xf7   :  { %v237_v42 = vmul.f32 0.25, %v227_v40  ;;  %v241_v43 = vmul.f32 %v227_v40, %v227_v40  ;;  %v229_v44 = vadd.f32 %v228_v41, %v225_v39 }
  0xf9   :  { %v238_v45 = vadd.f32 %v237_v42, %v156_v21  ;;  %v242_v46 = vmul.f32 0.25, %v241_v43 }
  0xfb   :  { %239 = vst [vmem:[#allocation8] sm:$0xff] %v238_v45  ;;  %v243_v47 = vsub.f32 %v229_v44, %v242_v46 }
  0xfc   :  { %366 = shalt.err (!%p363_p0)
}
  0xfd   :  { %256 = dma.vmem_to_hbm [thread:$0]  %s254_s1, 128, %s444_s2, [#allocation5]   ;;  %v244_v48 = vmul.f32 0.33333334, %v243_v47 }
  0xfe   :  { %s375_s29 = scalar_lea.vmem %s264_s25, 128  ;;  %p380_p2 = scmp.lt.s32.totalorder %s264_s25, %s264_s25 }
  0xff   :  { %v245_v49 = vmax.f32 %v244_v48, 0.0  ;;  %p376_p1 = scmp.ne.s32.totalorder %s264_s25, %s375_s29  ;;  %p381_p3 = scmp.lt.s32.totalorder %s375_s29, %s375_s29 }
 0x101   :  { %246 = vst [vmem:[#allocation9] sm:$0xff] %v245_v49  ;;  %p382_p4 = por %p381_p3, %p380_p2 }
 0x103   :  { %p383_p5 = pnand %p382_p4, %p376_p1 }
 0x105   :  { %386 = shalt.err (!%p383_p5)
}
 0x106   :  { %266 = dma.vmem_to_hbm [thread:$0]  %s264_s25, 128, %s445_s3, [#allocation10]  }
 0x107   :  { %399 = dma.done.wait [#allocation5], 128  }
 0x108   :  { %400 = vsyncadd [#allocation5], 4294967168 }
 0x109   :  { %401 = dma.done.wait [#allocation10], 128  }
 0x10a   :  { %402 = vsyncadd [#allocation10], 4294967168 }
 0x10b   :  { %273 = vsyncpa [#allocation4], 1 }
 0x10c   :  { %274 = vsyncpa [#allocation7], 1 }
 0x10d   :  { %275 = vsyncpa [#allocation5], 1 }
 0x10e   :  { %276 = vsyncpa [#allocation10], 1 }

</bundles_post_ra>
